<compile_context>
chip_gen: v5e
topology: v5e:2x2
jax: 0.10.0
libtpu: 0.0.40
codegen_flags: <defaults>
</compile_context>

<pallas_src>
import functools

import jax
import jax.numpy as jnp
from jax import lax
from jax.experimental import pallas as pl
from jax.experimental.pallas import tpu as pltpu


def _gap_fc_kernel(x_ref, w_ref, b_ref, o_ref, acc_ref, *,
                   hw_total, block_hw, mask_partial, strip_acc):
    # x_ref:   (TN, C, THW)          input chunk
    # w_ref:   (C, O)                weight, pre-transposed, pre-scaled by 1/(H*W)
    # b_ref:   (1, O)                bias
    # o_ref:   (TN, O)               output tile (resident across HW axis)
    # acc_ref: (TN, C, 128) or (TN, C) f32 running spatial sum
    k = pl.program_id(1)
    n_hw = pl.num_programs(1)

    @pl.when(k == 0)
    def _():
        acc_ref[...] = jnp.zeros_like(acc_ref)

    def accumulate(xv):
        if strip_acc:
            # Lane-aligned 128-wide strips: pure VPU adds, no XLU in hot loop.
            acc = acc_ref[...]
            for s in range(block_hw // 128):
                acc = acc + xv[:, :, s * 128:(s + 1) * 128].astype(jnp.float32)
            acc_ref[...] = acc
        else:
            acc_ref[...] += jnp.sum(xv.astype(jnp.float32), axis=-1)

    x = x_ref[...]
    if mask_partial:
        # Only the last HW chunk is padded; keep the full-chunk fast path clean.
        is_last = k == n_hw - 1

        @pl.when(jnp.logical_not(is_last))
        def _():
            accumulate(x)

        @pl.when(is_last)
        def _():
            idx = lax.broadcasted_iota(jnp.int32, x.shape, dimension=2)
            valid = (k * block_hw + idx) < hw_total
            accumulate(jnp.where(valid, x, jnp.zeros_like(x)))
    else:
        accumulate(x)

    @pl.when(k == n_hw - 1)
    def _():
        if strip_acc:
            pooled = jnp.sum(acc_ref[...], axis=-1)       # single XLU reduce
        else:
            pooled = acc_ref[...]                         # (TN, C) f32
        w = w_ref[...]                                    # (C, O), already /HW
        if w.dtype != jnp.float32:
            # bf16-in / f32-acc MXU path when the model is bf16.
            pooled = pooled.astype(w.dtype)
        y = jnp.dot(pooled, w, preferred_element_type=jnp.float32)
        y = y + b_ref[...].astype(jnp.float32)
        o_ref[...] = y.astype(o_ref.dtype)


def _round_up(v, m):
    return ((v + m - 1) // m) * m


def global_avg_pool2d_fc(x, weight, bias, *, target_block_bytes=None):
    """x: (N, C, H, W); weight: (O, C) [torch Linear layout]; bias: (O,)."""
    N, C, H, W = x.shape
    O = weight.shape[0]
    HW = H * W
    itemsize = jnp.dtype(x.dtype).itemsize

    x_flat = x.reshape(N, C, HW)                          # layout reshape only
    # Fold 1/(H*W) into the weight so the kernel only sums.
    w_t = (weight.T.astype(jnp.float32) / float(HW)).astype(weight.dtype)  # (C, O)
    b2 = bias.reshape(1, O)
    w_item = jnp.dtype(w_t.dtype).itemsize

    # --- device budget ---------------------------------------------------
    try:
        info = pltpu.get_tpu_info()
        vmem_cap = int(getattr(info, "vmem_capacity_bytes", 0)) or (64 << 20)
    except Exception:
        vmem_cap = 64 << 20                               # conservative (v7x per-TC)
    target_bytes = target_block_bytes or min(8 << 20, max(2 << 20, vmem_cap // 8))

    # --- batch tile ------------------------------------------------------
    # Keep >= 2 batch tiles when feasible so the "parallel" axis can shard
    # across v7x's two TensorCores.
    if N <= 8:
        TN = N
    elif N <= 256:
        TN = _round_up(-(-N // 2), 8)
    else:
        TN = 128

    # --- spatial tile ----------------------------------------------------
    # Minimum contiguous DMA row ~1 KiB (but never more than HW).
    min_thw = min(HW, max(128, _round_up(max(1, 1024 // itemsize), 128)))
    # Shrink TN (multiples of 8) before letting the row width collapse.
    while TN > 8 and TN * C * min_thw * itemsize > target_bytes:
        TN = max(8, _round_up(TN // 2, 8))

    max_hw_elems = max(min_thw, target_bytes // (TN * C * itemsize))
    if HW <= max_hw_elems:
        THW = HW
    else:
        THW = max(128, (max_hw_elems // 128) * 128)
    # Last-resort clamp for extreme C so double-buffered x stays in VMEM.
    # TODO(synk): block over C (with K-accumulated matmul) for pathological C.
    while THW > 128 and 2 * TN * C * THW * itemsize > int(0.6 * vmem_cap):
        THW = max(128, ((THW // 2) // 128) * 128)

    # Strip-folded accumulator only when it is cheap to hold in VMEM.
    can_strip = TN * C * 128 * 4 <= (4 << 20)
    if can_strip and THW < HW and THW > 128 * 64:
        THW = 128 * 64                    # bound the unrolled per-chunk adds
    num_hw = pl.cdiv(HW, THW)
    mask_partial = (HW % THW) != 0
    strip_acc = bool(can_strip and num_hw > 1 and (THW % 128 == 0))
    acc_shape = (TN, C, 128) if strip_acc else (TN, C)

    # --- VMEM budget / cost hint ------------------------------------------
    est = (2 * TN * C * THW * itemsize                    # double-buffered x
           + 2 * C * O * w_item + 2 * O * w_item          # weight + bias
           + 2 * TN * O * itemsize                        # output
           + TN * C * (128 if strip_acc else 1) * 4)      # accumulator
    vmem_limit = int(min(max(est * 1.5 + (8 << 20), 32 << 20), 0.75 * vmem_cap))

    cost = pl.CostEstimate(
        flops=N * C * HW + 2 * N * C * O,
        transcendentals=0,
        bytes_accessed=N * C * HW * itemsize + C * O * w_item + N * O * itemsize)

    kernel = functools.partial(_gap_fc_kernel,
                               hw_total=HW, block_hw=THW,
                               mask_partial=mask_partial, strip_acc=strip_acc)

    def _build(weight_pipeline_mode):
        extra = {} if weight_pipeline_mode is None else {
            "pipeline_mode": weight_pipeline_mode}
        return pl.pallas_call(
            kernel,
            out_shape=jax.ShapeDtypeStruct((N, O), x.dtype),
            grid_spec=pltpu.PrefetchScalarGridSpec(
                num_scalar_prefetch=0,
                grid=(pl.cdiv(N, TN), num_hw),
                in_specs=[
                    pl.BlockSpec((TN, C, THW), lambda i, k: (i, 0, k)),
                    pl.BlockSpec((C, O), lambda i, k: (0, 0), **extra),
                    pl.BlockSpec((1, O), lambda i, k: (0, 0), **extra),
                ],
                out_specs=pl.BlockSpec((TN, O), lambda i, k: (i, 0)),
                scratch_shapes=[pltpu.VMEM(acc_shape, jnp.float32)],
            ),
            compiler_params=pltpu.CompilerParams(
                dimension_semantics=("parallel", "arbitrary"),
                vmem_limit_bytes=vmem_limit),
            cost_estimate=cost,
        )

    try:
        # Resident (constant-index) weight/bias: single-buffer to halve their
        # VMEM footprint.
        out = _build(pl.Buffered(1))(x_flat, w_t, b2)
        return jax.block_until_ready(out)
    except Exception:
        # Fallback if this jax version rejects pipeline_mode on pallas_call
        # BlockSpecs (default double-buffered weight/bias).
        return _build(None)(x_flat, w_t, b2)


def _reference(x, weight, bias):
    return jnp.mean(x, axis=(2, 3)) @ weight.T + bias


if __name__ == "__main__":
    key = jax.random.PRNGKey(0)

    # --- test 1: module-default small shapes (single HW chunk path) -------
    k_x, k_w, k_b = jax.random.split(key, 3)
    N, C, H, W, O = 2, 4, 16, 16, 8
    x = jax.random.normal(k_x, (N, C, H, W), dtype=jnp.float32)
    weight = jax.random.normal(k_w, (O, C), dtype=jnp.float32) * 0.1
    bias = jax.random.normal(k_b, (O,), dtype=jnp.float32) * 0.1

    out = global_avg_pool2d_fc(x, weight, bias)
    out = jax.block_until_ready(out)
    ref = _reference(x, weight, bias)
    assert out.shape == (N, O)
    assert jnp.allclose(out, ref, atol=1e-5, rtol=1e-5)

    # --- test 2: force the multi-chunk / strip-accumulator / masked path ---
    k_x2, k_w2, k_b2 = jax.random.split(jax.random.PRNGKey(0), 3)
    N2, C2, H2, W2, O2 = 18, 8, 20, 20, 16
    x2 = jax.random.normal(k_x2, (N2, C2, H2, W2), dtype=jnp.float32)
    weight2 = jax.random.normal(k_w2, (O2, C2), dtype=jnp.float32) * 0.1
    bias2 = jax.random.normal(k_b2, (O2,), dtype=jnp.float32) * 0.1

    out2 = global_avg_pool2d_fc(x2, weight2, bias2, target_block_bytes=1024)
    out2 = jax.block_until_ready(out2)
    ref2 = _reference(x2, weight2, bias2)
    assert out2.shape == (N2, O2)
    assert jnp.allclose(out2, ref2, atol=1e-5, rtol=1e-4)

    print("KERNEL_OK")
</pallas_src>

<mosaic_0001>
module attributes {stable_mosaic.version = 11 : i64} {
  func.func @_gap_fc_kernel(%arg0: i32, %arg1: i32, %arg2: memref<2x4x256xf32, #tpu.memory_space<vmem>>, %arg3: memref<4x8xf32, #tpu.memory_space<vmem>>, %arg4: memref<1x8xf32, #tpu.memory_space<vmem>>, %arg5: memref<2x8xf32, #tpu.memory_space<vmem>>, %arg6: memref<2x4xf32, #tpu.memory_space<vmem>>) attributes {dimension_semantics = [#tpu.dimension_semantics<parallel>, #tpu.dimension_semantics<arbitrary>], iteration_bounds = array<i64: 1, 1>, scalar_prefetch = 0 : i64, scratch_operands = 1 : i64, tpu.core_type = #tpu.core_type<tc>, window_params = [{transform_indices = @transform_0, window_bounds = array<i64: 2, 4, 256>}, {pipeline_mode = #tpu.pipeline_mode<synchronous>, transform_indices = @transform_1, window_bounds = array<i64: 4, 8>}, {pipeline_mode = #tpu.pipeline_mode<synchronous>, transform_indices = @transform_2, window_bounds = array<i64: 1, 8>}, {transform_indices = @transform_3, window_bounds = array<i64: 2, 8>}]} {
    %c0_i32 = arith.constant 0 : i32
    %0 = arith.cmpi eq, %arg1, %c0_i32 : i32
    %1 = arith.extui %0 : i1 to i32
    %c0_i32_0 = arith.constant 0 : i32
    %2 = arith.cmpi ne, %1, %c0_i32_0 : i32
    scf.if %2 {
      %cst_9 = arith.constant 0.000000e+00 : f32
      %11 = vector.broadcast %cst_9 : f32 to vector<2x4xf32>
      %c0_10 = arith.constant 0 : index
      %c0_11 = arith.constant 0 : index
      %12 = vector.load %arg6[%c0_10, %c0_11] : memref<2x4xf32, #tpu.memory_space<vmem>>, vector<2x4xf32>
      tpu.vector_store %arg6[%c0_10, %c0_11], %11 {strides = array<i32>} : memref<2x4xf32, #tpu.memory_space<vmem>>, vector<2x4xf32>,
    } else {
    }
    %c0 = arith.constant 0 : index
    %c0_1 = arith.constant 0 : index
    %c0_2 = arith.constant 0 : index
    %3 = vector.load %arg2[%c0, %c0_1, %c0_2] : memref<2x4x256xf32, #tpu.memory_space<vmem>>, vector<2x4x256xf32>
    %c0_3 = arith.constant 0 : index
    %c0_4 = arith.constant 0 : index
    %4 = vector.load %arg6[%c0_3, %c0_4] : memref<2x4xf32, #tpu.memory_space<vmem>>, vector<2x4xf32>
    %cst = arith.constant dense<0.000000e+00> : vector<2x4xf32>
    %5 = vector.multi_reduction <add>, %3, %cst [2] : vector<2x4x256xf32> to vector<2x4xf32>
    %6 = arith.addf %4, %5 : vector<2x4xf32>
    %c0_5 = arith.constant 0 : index
    %c0_6 = arith.constant 0 : index
    %7 = vector.load %arg6[%c0_5, %c0_6] : memref<2x4xf32, #tpu.memory_space<vmem>>, vector<2x4xf32>
    tpu.vector_store %arg6[%c0_5, %c0_6], %6 {strides = array<i32>} : memref<2x4xf32, #tpu.memory_space<vmem>>, vector<2x4xf32>,
    %c0_i32_7 = arith.constant 0 : i32
    %8 = arith.cmpi eq, %arg1, %c0_i32_7 : i32
    %9 = arith.extui %8 : i1 to i32
    %c0_i32_8 = arith.constant 0 : i32
    %10 = arith.cmpi ne, %9, %c0_i32_8 : i32
    scf.if %10 {
      %c0_9 = arith.constant 0 : index
      %c0_10 = arith.constant 0 : index
      %11 = vector.load %arg6[%c0_9, %c0_10] : memref<2x4xf32, #tpu.memory_space<vmem>>, vector<2x4xf32>
      %c0_11 = arith.constant 0 : index
      %c0_12 = arith.constant 0 : index
      %12 = vector.load %arg3[%c0_11, %c0_12] : memref<4x8xf32, #tpu.memory_space<vmem>>, vector<4x8xf32>
      %cst_13 = arith.constant dense<0.000000e+00> : vector<2x8xf32>
      %13 = tpu.matmul %11, %12, %cst_13 {dimension_numbers = #tpu.dot_dimension_numbers<[1], [0], [0], [1], [0, 0, 1, 1], [], []>} : vector<2x4xf32>, vector<4x8xf32>, vector<2x8xf32> -> vector<2x8xf32>
      %c0_14 = arith.constant 0 : index
      %c0_15 = arith.constant 0 : index
      %14 = vector.load %arg4[%c0_14, %c0_15] : memref<1x8xf32, #tpu.memory_space<vmem>>, vector<1x8xf32>
      %15 = vector.broadcast %14 : vector<1x8xf32> to vector<2x8xf32>
      %16 = arith.addf %13, %15 : vector<2x8xf32>
      %c0_16 = arith.constant 0 : index
      %c0_17 = arith.constant 0 : index
      %17 = vector.load %arg5[%c0_16, %c0_17] : memref<2x8xf32, #tpu.memory_space<vmem>>, vector<2x8xf32>
      tpu.vector_store %arg5[%c0_16, %c0_17], %16 {strides = array<i32>} : memref<2x8xf32, #tpu.memory_space<vmem>>, vector<2x8xf32>,
    } else {
    }
    return
  }
  func.func @transform_0(%arg0: i32, %arg1: i32) -> (i32, i32, i32) {
    %c0_i32 = arith.constant 0 : i32
    %c0_i32_0 = arith.constant 0 : i32
    return %arg0, %c0_i32, %arg1 : i32, i32, i32
  }
  func.func @transform_1(%arg0: i32, %arg1: i32) -> (i32, i32) {
    %c0_i32 = arith.constant 0 : i32
    %c0_i32_0 = arith.constant 0 : i32
    %c0_i32_1 = arith.constant 0 : i32
    return %c0_i32, %c0_i32_0 : i32, i32
  }
  func.func @transform_2(%arg0: i32, %arg1: i32) -> (i32, i32) {
    %c0_i32 = arith.constant 0 : i32
    %c0_i32_0 = arith.constant 0 : i32
    %c0_i32_1 = arith.constant 0 : i32
    return %c0_i32, %c0_i32_0 : i32, i32
  }
  func.func @transform_3(%arg0: i32, %arg1: i32) -> (i32, i32) {
    %c0_i32 = arith.constant 0 : i32
    %c0_i32_0 = arith.constant 0 : i32
    return %arg0, %c0_i32 : i32, i32
  }
}

module attributes {stable_mosaic.version = 11 : i64} {
  func.func @_gap_fc_kernel(%arg0: i32, %arg1: i32, %arg2: memref<2x4x256xf32, #tpu.memory_space<vmem>>, %arg3: memref<4x8xf32, #tpu.memory_space<vmem>>, %arg4: memref<1x8xf32, #tpu.memory_space<vmem>>, %arg5: memref<2x8xf32, #tpu.memory_space<vmem>>, %arg6: memref<2x4xf32, #tpu.memory_space<vmem>>) attributes {dimension_semantics = [#tpu.dimension_semantics<parallel>, #tpu.dimension_semantics<arbitrary>], iteration_bounds = array<i64: 1, 1>, scalar_prefetch = 0 : i64, scratch_operands = 1 : i64, tpu.core_type = #tpu.core_type<tc>, window_params = [{transform_indices = @transform_0, window_bounds = array<i64: 2, 4, 256>}, {pipeline_mode = #tpu.pipeline_mode<synchronous>, transform_indices = @transform_1, window_bounds = array<i64: 4, 8>}, {pipeline_mode = #tpu.pipeline_mode<synchronous>, transform_indices = @transform_2, window_bounds = array<i64: 1, 8>}, {transform_indices = @transform_3, window_bounds = array<i64: 2, 8>}]} {
    %c0_i32 = arith.constant 0 : i32
    %0 = arith.cmpi eq, %arg1, %c0_i32 : i32
    %1 = arith.extui %0 : i1 to i32
    %c0_i32_0 = arith.constant 0 : i32
    %2 = arith.cmpi ne, %1, %c0_i32_0 : i32
    scf.if %2 {
      %cst_9 = arith.constant 0.000000e+00 : f32
      %11 = vector.broadcast %cst_9 : f32 to vector<2x4xf32>
      %c0_10 = arith.constant 0 : index
      %c0_11 = arith.constant 0 : index
      %12 = vector.load %arg6[%c0_10, %c0_11] : memref<2x4xf32, #tpu.memory_space<vmem>>, vector<2x4xf32>
      tpu.vector_store %arg6[%c0_10, %c0_11], %11 {strides = array<i32>} : memref<2x4xf32, #tpu.memory_space<vmem>>, vector<2x4xf32>,
    } else {
    }
    %c0 = arith.constant 0 : index
    %c0_1 = arith.constant 0 : index
    %c0_2 = arith.constant 0 : index
    %3 = vector.load %arg2[%c0, %c0_1, %c0_2] : memref<2x4x256xf32, #tpu.memory_space<vmem>>, vector<2x4x256xf32>
    %c0_3 = arith.constant 0 : index
    %c0_4 = arith.constant 0 : index
    %4 = vector.load %arg6[%c0_3, %c0_4] : memref<2x4xf32, #tpu.memory_space<vmem>>, vector<2x4xf32>
    %cst = arith.constant dense<0.000000e+00> : vector<2x4xf32>
    %5 = vector.multi_reduction <add>, %3, %cst [2] : vector<2x4x256xf32> to vector<2x4xf32>
    %6 = arith.addf %4, %5 : vector<2x4xf32>
    %c0_5 = arith.constant 0 : index
    %c0_6 = arith.constant 0 : index
    %7 = vector.load %arg6[%c0_5, %c0_6] : memref<2x4xf32, #tpu.memory_space<vmem>>, vector<2x4xf32>
    tpu.vector_store %arg6[%c0_5, %c0_6], %6 {strides = array<i32>} : memref<2x4xf32, #tpu.memory_space<vmem>>, vector<2x4xf32>,
    %c0_i32_7 = arith.constant 0 : i32
    %8 = arith.cmpi eq, %arg1, %c0_i32_7 : i32
    %9 = arith.extui %8 : i1 to i32
    %c0_i32_8 = arith.constant 0 : i32
    %10 = arith.cmpi ne, %9, %c0_i32_8 : i32
    scf.if %10 {
      %c0_9 = arith.constant 0 : index
      %c0_10 = arith.constant 0 : index
      %11 = vector.load %arg6[%c0_9, %c0_10] : memref<2x4xf32, #tpu.memory_space<vmem>>, vector<2x4xf32>
      %c0_11 = arith.constant 0 : index
      %c0_12 = arith.constant 0 : index
      %12 = vector.load %arg3[%c0_11, %c0_12] : memref<4x8xf32, #tpu.memory_space<vmem>>, vector<4x8xf32>
      %cst_13 = arith.constant dense<0.000000e+00> : vector<2x8xf32>
      %13 = tpu.matmul %11, %12, %cst_13 {dimension_numbers = #tpu.dot_dimension_numbers<[1], [0], [0], [1], [0, 0, 1, 1], [], []>} : vector<2x4xf32>, vector<4x8xf32>, vector<2x8xf32> -> vector<2x8xf32>
      %c0_14 = arith.constant 0 : index
      %c0_15 = arith.constant 0 : index
      %14 = vector.load %arg4[%c0_14, %c0_15] : memref<1x8xf32, #tpu.memory_space<vmem>>, vector<1x8xf32>
      %15 = vector.broadcast %14 : vector<1x8xf32> to vector<2x8xf32>
      %16 = arith.addf %13, %15 : vector<2x8xf32>
      %c0_16 = arith.constant 0 : index
      %c0_17 = arith.constant 0 : index
      %17 = vector.load %arg5[%c0_16, %c0_17] : memref<2x8xf32, #tpu.memory_space<vmem>>, vector<2x8xf32>
      tpu.vector_store %arg5[%c0_16, %c0_17], %16 {strides = array<i32>} : memref<2x8xf32, #tpu.memory_space<vmem>>, vector<2x8xf32>,
    } else {
    }
    return
  }
  func.func @transform_0(%arg0: i32, %arg1: i32) -> (i32, i32, i32) {
    %c0_i32 = arith.constant 0 : i32
    %c0_i32_0 = arith.constant 0 : i32
    return %arg0, %c0_i32, %arg1 : i32, i32, i32
  }
  func.func @transform_1(%arg0: i32, %arg1: i32) -> (i32, i32) {
    %c0_i32 = arith.constant 0 : i32
    %c0_i32_0 = arith.constant 0 : i32
    %c0_i32_1 = arith.constant 0 : i32
    return %c0_i32, %c0_i32_0 : i32, i32
  }
  func.func @transform_2(%arg0: i32, %arg1: i32) -> (i32, i32) {
    %c0_i32 = arith.constant 0 : i32
    %c0_i32_0 = arith.constant 0 : i32
    %c0_i32_1 = arith.constant 0 : i32
    return %c0_i32, %c0_i32_0 : i32, i32
  }
  func.func @transform_3(%arg0: i32, %arg1: i32) -> (i32, i32) {
    %c0_i32 = arith.constant 0 : i32
    %c0_i32_0 = arith.constant 0 : i32
    return %arg0, %c0_i32 : i32, i32
  }
}

</mosaic_0001>

<bundles_post_ra>
// kernel: tpu_custom_call.1
= control target key start
LH: loop header
LB: loop body
LE: loop exit
PB: predicated region body
PF: predicated region fallthrough
CT: control target
= control target key end

     0   :  { %8 = vsyncpa [#allocation4], 0  ;;  %s276_s0 = inlined_call_operand.hbm [shape: f32[2,4,256], index: 0, kind: input, shape index: {}]   ;;  %s277_s1 = inlined_call_operand.hbm [shape: f32[4,8], index: 1, kind: input, shape index: {}]   ;;  %s278_s2 = inlined_call_operand.vmem [shape: f32[1,8], index: 2, kind: input, shape index: {}]   ;;  %s279_s3 = inlined_call_operand.hbm [shape: f32[2,8], index: 3, kind: output, shape index: {}]  }
   0x1   :  { %9 = vsyncpa [#allocation7], 0 }
   0x2   :  { %10 = vsyncpa [#allocation5], 0  ;;  %s15_s14 = sshll.u32 %s276_s0, 4  ;;  %s233_s15 = smov [#allocation3]   ;;  %s16_s14 = int_to_ptr.hbm [resolvable:$true] %s15_s14 }
   0x3   :  { %s17_s16 = sshll.u32 %s233_s15, 4  ;;  %s29_s19 = sshll.u32 %s277_s1, 4  ;;  %s18_s16 = int_to_ptr.vmem [resolvable:$true] %s17_s16  ;;  %s30_s19 = int_to_ptr.hbm [resolvable:$true] %s29_s19 }
   0x4   :  { %s234_s20 = smov 128   ;;  %s235_s21 = smov 8  }
   0x5   :  { %23 = dma.hbm_to_vmem [thread:$0]  %s16_s14, 256, %s18_s16, [#allocation4], %s234_s20, %s234_s20, %s235_s21  }
   0x6   :  { %s236_s22 = smov [#allocation6]  }
   0x7   :  { %s31_s23 = sshll.u32 %s236_s22, 4  ;;  %s32_s23 = int_to_ptr.vmem [resolvable:$true] %s31_s23 }
   0x8   :  { %34 = dma.hbm_to_vmem [thread:$0]  %s30_s19, 64, %s32_s23, [#allocation7]  }
   0x9   :  { %227 = dma.done.wait [#allocation4], 256  }
   0xa   :  { %228 = vsyncadd [#allocation4], 4294967040 }
   0xb   :  { %229 = dma.done.wait [#allocation7], 64  }
   0xc   :  { %230 = vsyncadd [#allocation7], 4294967232  ;;  %v51_v0 = vld [vmem:[#allocation3] sm:$0xff]  ;;  %v52_v1 = vld [vmem:[#allocation3 + $0x8] sm:$0xff]  ;;  %vm67_vm0 = vcmask 1043456   ;;  %vm49_vm1 = vcmask 25600   ;;  %v80_v15 = vlaneseq }
   0xd   :  { %56 = vst [vmem:[#allocation1] ss:$2 sm:$0xff] %v51_v0  ;;  %v237_v12 = vmov 0.0   ;;  %v94_v13 = vld [vmem:[#allocation6] sm:$0xf]  ;;  %vm84_vm2 = vcmask 1041409  }
   0xe   :  { %60 = vst [vmem:[#allocation1 + $0x10] ss:$2 sm:$0xff] %v52_v1  ;;  %146 = vmatpush.msk.msra.mxu0 %vm67_vm0, %v94_v13  ;;  %v81_v16 = vand.u32 127, %v80_v15  ;;  %vm99_vm3 = vcmask 31744   ;;  %v154_v24 = vld [vmem:[%s278_s2] ss:$0 sm:$0xff] }
   0xf   :  { %50 = vst.msk [vmem:[#allocation2] sm:$0x3] %vm49_vm1, %v237_v12  ;;  %s238_s24 = smov [#allocation8]   ;;  %s135_s28 = sshll.u32 %s279_s3, 4  ;;  %vm126_vm4 = vcmask 58368   ;;  %s136_s28 = int_to_ptr.hbm [resolvable:$true] %s135_s28 }
  0x10   :  { %s133_s25 = sshll.u32 %s238_s24, 4  ;;  %s134_s25 = int_to_ptr.vmem [resolvable:$true] %s133_s25 }
  0x14   :  { %v57_v2 = vld.sshfl [vmem:[#allocation1] sm:$0xff pattern:$0x75316420]  ;;  %v58_v3 = vld.sshfl [vmem:[#allocation1 + $0x8] sm:$0xff pattern:$0x75316420] }
  0x15   :  { %v68_v4 = vsel %vm67_vm0, %v57_v2, 0.0  ;;  %v69_v5 = vsel %vm67_vm0, %v58_v3, 0.0  ;;  %v61_v7 = vld.sshfl [vmem:[#allocation1 + $0x10] sm:$0xff pattern:$0x75316420] }
  0x16   :  { %v70_v6 = vadd.f32 %v69_v5, %v68_v4  ;;  %v62_v8 = vld.sshfl [vmem:[#allocation1 + $0x18] sm:$0xff pattern:$0x75316420]  ;;  %v73_v9 = vsel %vm67_vm0, %v61_v7, 0.0  ;;  %v53_v19 = vld [vmem:[#allocation2] sm:$0x3] }
  0x17   :  { %v74_v10 = vsel %vm67_vm0, %v62_v8, 0.0 }
  0x18   :  { %71 = vadd.xlane.f32.xlu0 %v70_v6  ;;  %v75_v11 = vadd.f32 %v74_v10, %v73_v9 }
  0x20   :  { %76 = vadd.xlane.f32.xlu0 %v75_v11 }
  0x8b   :  { %v72_v14 = vpop.xlane.xlu0 %71 }
  0x8c   :  { %v82_v18 = vperm.slane %v72_v14, %v81_v16 }
  0x93   :  { %v77_v17 = vpop.xlane.xlu0 %76 }
  0x94   :  { %v83_v20 = vperm.slane %v77_v17, %v81_v16 }
  0x96   :  { %v85_v21 = vsel %vm84_vm2, %v83_v20, %v82_v18 }
  0x97   :  { %v87_v22 = vadd.f32 %v85_v21, %v53_v19 }
  0x99   :  { %89 = vst.msk [vmem:[#allocation2] sm:$0x3] %vm49_vm1, %v87_v22 }
  0xa0   :  { %v93_v23 = vld [vmem:[#allocation2] sm:$0x3] }
  0xa1   :  { %147 = vmatmul.msk.f32.vlgmr.msra.gmra.mxu0 %vm99_vm3, %v93_v23 }
 0x11e   :  { %v123_v25 = vpop.f32.mrf.mxu0 }
 0x11f   :  { %v124_v26 = vadd.f32 %v154_v24, %v123_v25 }
 0x121   :  { %127 = vst.msk [vmem:[#allocation8] sm:$0x3] %vm126_vm4, %v124_v26 }
 0x122   :  { %138 = dma.vmem_to_hbm [thread:$0]  %s134_s25, 32, %s136_s28, [#allocation5]  }
 0x123   :  { %231 = dma.done.wait [#allocation5], 32  }
 0x124   :  { %232 = vsyncadd [#allocation5], 4294967264 }
 0x125   :  { %143 = vsyncpa [#allocation4], 1 }
 0x126   :  { %144 = vsyncpa [#allocation7], 1 }
 0x127   :  { %145 = vsyncpa [#allocation5], 1 }

// kernel: tpu_custom_call.1
= control target key start
LH: loop header
LB: loop body
LE: loop exit
PB: predicated region body
PF: predicated region fallthrough
CT: control target
= control target key end

     0   :  { %8 = vsyncpa [#allocation4], 0  ;;  %s276_s0 = inlined_call_operand.hbm [shape: f32[2,4,256], index: 0, kind: input, shape index: {}]   ;;  %s277_s1 = inlined_call_operand.hbm [shape: f32[4,8], index: 1, kind: input, shape index: {}]   ;;  %s278_s2 = inlined_call_operand.vmem [shape: f32[1,8], index: 2, kind: input, shape index: {}]   ;;  %s279_s3 = inlined_call_operand.hbm [shape: f32[2,8], index: 3, kind: output, shape index: {}]  }
   0x1   :  { %9 = vsyncpa [#allocation7], 0 }
   0x2   :  { %10 = vsyncpa [#allocation5], 0  ;;  %s15_s14 = sshll.u32 %s276_s0, 4  ;;  %s233_s15 = smov [#allocation3]   ;;  %s16_s14 = int_to_ptr.hbm [resolvable:$true] %s15_s14 }
   0x3   :  { %s17_s16 = sshll.u32 %s233_s15, 4  ;;  %s29_s19 = sshll.u32 %s277_s1, 4  ;;  %s18_s16 = int_to_ptr.vmem [resolvable:$true] %s17_s16  ;;  %s30_s19 = int_to_ptr.hbm [resolvable:$true] %s29_s19 }
   0x4   :  { %s234_s20 = smov 128   ;;  %s235_s21 = smov 8  }
   0x5   :  { %23 = dma.hbm_to_vmem [thread:$0]  %s16_s14, 256, %s18_s16, [#allocation4], %s234_s20, %s234_s20, %s235_s21  }
   0x6   :  { %s236_s22 = smov [#allocation6]  }
   0x7   :  { %s31_s23 = sshll.u32 %s236_s22, 4  ;;  %s32_s23 = int_to_ptr.vmem [resolvable:$true] %s31_s23 }
   0x8   :  { %34 = dma.hbm_to_vmem [thread:$0]  %s30_s19, 64, %s32_s23, [#allocation7]  }
   0x9   :  { %227 = dma.done.wait [#allocation4], 256  }
   0xa   :  { %228 = vsyncadd [#allocation4], 4294967040 }
   0xb   :  { %229 = dma.done.wait [#allocation7], 64  }
   0xc   :  { %230 = vsyncadd [#allocation7], 4294967232  ;;  %v51_v0 = vld [vmem:[#allocation3] sm:$0xff]  ;;  %v52_v1 = vld [vmem:[#allocation3 + $0x8] sm:$0xff]  ;;  %vm67_vm0 = vcmask 1043456   ;;  %vm49_vm1 = vcmask 25600   ;;  %v80_v15 = vlaneseq }
   0xd   :  { %56 = vst [vmem:[#allocation1] ss:$2 sm:$0xff] %v51_v0  ;;  %v237_v12 = vmov 0.0   ;;  %v94_v13 = vld [vmem:[#allocation6] sm:$0xf]  ;;  %vm84_vm2 = vcmask 1041409  }
   0xe   :  { %60 = vst [vmem:[#allocation1 + $0x10] ss:$2 sm:$0xff] %v52_v1  ;;  %146 = vmatpush.msk.msra.mxu0 %vm67_vm0, %v94_v13  ;;  %v81_v16 = vand.u32 127, %v80_v15  ;;  %vm99_vm3 = vcmask 31744   ;;  %v154_v24 = vld [vmem:[%s278_s2] ss:$0 sm:$0xff] }
   0xf   :  { %50 = vst.msk [vmem:[#allocation2] sm:$0x3] %vm49_vm1, %v237_v12  ;;  %s238_s24 = smov [#allocation8]   ;;  %s135_s28 = sshll.u32 %s279_s3, 4  ;;  %vm126_vm4 = vcmask 58368   ;;  %s136_s28 = int_to_ptr.hbm [resolvable:$true] %s135_s28 }
  0x10   :  { %s133_s25 = sshll.u32 %s238_s24, 4  ;;  %s134_s25 = int_to_ptr.vmem [resolvable:$true] %s133_s25 }
  0x14   :  { %v57_v2 = vld.sshfl [vmem:[#allocation1] sm:$0xff pattern:$0x75316420]  ;;  %v58_v3 = vld.sshfl [vmem:[#allocation1 + $0x8] sm:$0xff pattern:$0x75316420] }
  0x15   :  { %v68_v4 = vsel %vm67_vm0, %v57_v2, 0.0  ;;  %v69_v5 = vsel %vm67_vm0, %v58_v3, 0.0  ;;  %v61_v7 = vld.sshfl [vmem:[#allocation1 + $0x10] sm:$0xff pattern:$0x75316420] }
  0x16   :  { %v70_v6 = vadd.f32 %v69_v5, %v68_v4  ;;  %v62_v8 = vld.sshfl [vmem:[#allocation1 + $0x18] sm:$0xff pattern:$0x75316420]  ;;  %v73_v9 = vsel %vm67_vm0, %v61_v7, 0.0  ;;  %v53_v19 = vld [vmem:[#allocation2] sm:$0x3] }
  0x17   :  { %v74_v10 = vsel %vm67_vm0, %v62_v8, 0.0 }
  0x18   :  { %71 = vadd.xlane.f32.xlu0 %v70_v6  ;;  %v75_v11 = vadd.f32 %v74_v10, %v73_v9 }
  0x20   :  { %76 = vadd.xlane.f32.xlu0 %v75_v11 }
  0x8b   :  { %v72_v14 = vpop.xlane.xlu0 %71 }
  0x8c   :  { %v82_v18 = vperm.slane %v72_v14, %v81_v16 }
  0x93   :  { %v77_v17 = vpop.xlane.xlu0 %76 }
  0x94   :  { %v83_v20 = vperm.slane %v77_v17, %v81_v16 }
  0x96   :  { %v85_v21 = vsel %vm84_vm2, %v83_v20, %v82_v18 }
  0x97   :  { %v87_v22 = vadd.f32 %v85_v21, %v53_v19 }
  0x99   :  { %89 = vst.msk [vmem:[#allocation2] sm:$0x3] %vm49_vm1, %v87_v22 }
  0xa0   :  { %v93_v23 = vld [vmem:[#allocation2] sm:$0x3] }
  0xa1   :  { %147 = vmatmul.msk.f32.vlgmr.msra.gmra.mxu0 %vm99_vm3, %v93_v23 }
 0x11e   :  { %v123_v25 = vpop.f32.mrf.mxu0 }
 0x11f   :  { %v124_v26 = vadd.f32 %v154_v24, %v123_v25 }
 0x121   :  { %127 = vst.msk [vmem:[#allocation8] sm:$0x3] %vm126_vm4, %v124_v26 }
 0x122   :  { %138 = dma.vmem_to_hbm [thread:$0]  %s134_s25, 32, %s136_s28, [#allocation5]  }
 0x123   :  { %231 = dma.done.wait [#allocation5], 32  }
 0x124   :  { %232 = vsyncadd [#allocation5], 4294967264 }
 0x125   :  { %143 = vsyncpa [#allocation4], 1 }
 0x126   :  { %144 = vsyncpa [#allocation7], 1 }
 0x127   :  { %145 = vsyncpa [#allocation5], 1 }

</bundles_post_ra>
